<compile_context>
chip_gen: v5e
topology: v5e:2x2
jax: 0.10.0
libtpu: 0.0.40
codegen_flags: <defaults>
</compile_context>

<pallas_src>
import functools

import jax
import jax.numpy as jnp
from jax.experimental import pallas as pl
from jax.experimental.pallas import tpu as pltpu


def _round_up(n, m):
    return (n + m - 1) // m * m


_TARGET_W_TILE_BYTES = 8 * 1024 * 1024   # ~8 MiB W tile, 2x buffered = 16 MiB
_VMEM_LIMIT_BYTES = 48 * 1024 * 1024     # headroom, under v7x's 64 MiB physical


# ----------------------------------------------------------------------------
# Kernels
# ----------------------------------------------------------------------------

def _generator_kernel_fused_k(x_ref, w_ref, b_ref, o_ref):
    # grid = (n_v,). Entire d_model reduction in one MXU pass; f32 accumulate,
    # bias add and cast exactly once per output tile. No scratch, no pl.when.
    acc = jnp.dot(x_ref[...], w_ref[...], preferred_element_type=jnp.float32)
    o_ref[...] = (acc + b_ref[...]).astype(o_ref.dtype)


def _generator_kernel_tiled_k(x_ref, w_ref, b_ref, o_ref, acc_ref, *, tk):
    # grid = (n_v, n_k); axis 1 is the d_model reduction (last, "arbitrary").
    # x is resident ([Bp, Dp], constant index_map); slice the K-chunk in-kernel.
    k = pl.program_id(1)

    @pl.when(k == 0)
    def _():
        acc_ref[...] = jnp.zeros_like(acc_ref)

    start = pl.multiple_of(k * tk, tk)
    x_blk = x_ref[:, pl.ds(start, tk)]
    acc_ref[...] += jnp.dot(x_blk, w_ref[...],
                            preferred_element_type=jnp.float32)

    @pl.when(k == pl.num_programs(1) - 1)
    def _():
        o_ref[...] = (acc_ref[...] + b_ref[...]).astype(o_ref.dtype)


# ----------------------------------------------------------------------------
# Tile selection + one-time parameter preparation
# ----------------------------------------------------------------------------

def _select_tiles(D, V, w_itemsize, *, max_w_tile_bytes):
    Dp = _round_up(D, 128)
    Vp128 = _round_up(V, 128)
    max_elems = max(128 * 128, max_w_tile_bytes // w_itemsize)

    # Collapse the reduction axis whenever a (Dp x 128) W slab fits the budget
    # (true for any realistic d_model); otherwise stream K in 128-aligned chunks.
    if Dp * 128 <= max_elems:
        tk = Dp
    else:
        tk = max(128, (max_elems // 128) // 128 * 128)

    tv = max(128, (max_elems // tk) // 128 * 128)
    tv = min(tv, Vp128)
    # Megacore guard (v7x): keep >= 2 vocab tiles so both TensorCores get work.
    if Vp128 >= 256:
        tv = min(tv, max(128, (Vp128 // 2) // 128 * 128))

    Dp = _round_up(D, tk)
    Vp = _round_up(V, tv)
    return tk, tv, Dp, Vp


def generator_init(w, b, *, w_dtype=jnp.bfloat16,
                   max_w_tile_bytes=_TARGET_W_TILE_BYTES):
    """One-time param prep: cast W to the streaming dtype and pre-pad to tile
    boundaries so no per-call padded copy of W is materialized in HBM."""
    D, V = w.shape
    w_itemsize = jnp.dtype(w_dtype).itemsize
    tk, tv, Dp, Vp = _select_tiles(D, V, w_itemsize,
                                   max_w_tile_bytes=max_w_tile_bytes)
    wp = jnp.pad(w.astype(w_dtype), ((0, Dp - D), (0, Vp - V)))
    bp = jnp.pad(b.astype(jnp.float32), (0, Vp - V)).reshape(1, Vp)
    return {"wp": wp, "bp": bp, "w_dtype": jnp.dtype(w_dtype),
            "tk": tk, "tv": tv, "D": D, "V": V, "Dp": Dp, "Vp": Vp}


# ----------------------------------------------------------------------------
# Forward
# ----------------------------------------------------------------------------

def generator_forward(x, params):
    """Generator.forward: out = x[:, 0, :] @ W + b  with W = [d_model, vocab]."""
    wp, bp = params["wp"], params["bp"]
    tk, tv = params["tk"], params["tv"]
    D, V, Dp, Vp = params["D"], params["V"], params["Dp"], params["Vp"]
    B = x.shape[0]
    out_dtype = x.dtype

    # Slice token 0 *before* the pallas_call: only [B, D] activation bytes move.
    x0 = x[:, 0, :]

    # Match MXU input dtype to the streamed weights (bf16 halves activation
    # bytes too); accumulation stays f32 in-kernel.
    w_dt = params["w_dtype"]
    x_dt = jnp.bfloat16 if w_dt == jnp.dtype(jnp.bfloat16) else x.dtype
    sub = 16 if jnp.dtype(x_dt).itemsize == 2 else 8   # bf16 sublane packing
    Bp = _round_up(B, sub)
    x0p = jnp.pad(x0.astype(x_dt), ((0, Bp - B), (0, Dp - D)))

    n_v = Vp // tv
    n_k = Dp // tk

    cost = pl.CostEstimate(
        flops=2 * Bp * Dp * Vp,
        transcendentals=0,
        bytes_accessed=(x0p.size * x0p.dtype.itemsize
                        + wp.size * wp.dtype.itemsize
                        + bp.size * bp.dtype.itemsize
                        + Bp * Vp * jnp.dtype(out_dtype).itemsize),
    )

    if n_k == 1:
        kernel = _generator_kernel_fused_k
        grid = (n_v,)
        in_specs = [
            pl.BlockSpec((Bp, Dp), lambda j: (0, 0)),    # x0: resident, DMA'd once
            pl.BlockSpec((Dp, tv), lambda j: (0, j)),    # W: streamed, double-buffered
            pl.BlockSpec((1, tv), lambda j: (0, j)),     # bias tile
        ]
        out_specs = pl.BlockSpec((Bp, tv), lambda j: (0, j))
        scratch_shapes = []
        dim_sem = ("parallel",)
    else:
        kernel = functools.partial(_generator_kernel_tiled_k, tk=tk)
        grid = (n_v, n_k)
        in_specs = [
            pl.BlockSpec((Bp, Dp), lambda j, k: (0, 0)),  # x0: resident, DMA'd once
            pl.BlockSpec((tk, tv), lambda j, k: (k, j)),  # W: streamed
            pl.BlockSpec((1, tv), lambda j, k: (0, j)),   # bias tile
        ]
        out_specs = pl.BlockSpec((Bp, tv), lambda j, k: (0, j))
        scratch_shapes = [pltpu.VMEM((Bp, tv), jnp.float32)]
        dim_sem = ("parallel", "arbitrary")

    out = pl.pallas_call(
        kernel,
        out_shape=jax.ShapeDtypeStruct((Bp, Vp), out_dtype),
        grid_spec=pltpu.PrefetchScalarGridSpec(
            num_scalar_prefetch=0,
            grid=grid,
            in_specs=in_specs,
            out_specs=out_specs,
            scratch_shapes=scratch_shapes,
        ),
        compiler_params=pltpu.CompilerParams(
            dimension_semantics=dim_sem,
            vmem_limit_bytes=_VMEM_LIMIT_BYTES,
        ),
        cost_estimate=cost,
    )(x0p, wp, bp)

    return out[:B, :V]


if __name__ == "__main__":
    # Small shapes consistent with the module: batch=2, seq=8, d_model=32, vocab=16.
    B, S, D, V = 2, 8, 32, 16
    key = jax.random.PRNGKey(0)
    kx, kw, kb = jax.random.split(key, 3)

    x = jax.random.normal(kx, (B, S, D), dtype=jnp.float32)

    # Deterministic Linear(d_model, vocab) parameters (PyTorch-style uniform init),
    # stored as [d_model, vocab] (transposed nn.Linear weight).
    bound = 1.0 / (D ** 0.5)
    w = jax.random.uniform(kw, (D, V), minval=-bound, maxval=bound,
                           dtype=jnp.float32)
    b = jax.random.uniform(kb, (V,), minval=-bound, maxval=bound,
                           dtype=jnp.float32)

    # --- Default path: bf16-streamed W, collapsed reduction (n_k == 1). -----
    params_bf16 = generator_init(w, b, w_dtype=jnp.bfloat16)
    out_bf16 = jax.block_until_ready(generator_forward(x, params_bf16))
    x0_bf = x[:, 0, :].astype(jnp.bfloat16).astype(jnp.float32)
    w_bf = w.astype(jnp.bfloat16).astype(jnp.float32)
    ref_bf16 = x0_bf @ w_bf + b            # same bf16 rounding, f32 accumulate
    assert out_bf16.shape == (B, V)
    assert jnp.allclose(out_bf16, ref_bf16, atol=1e-4, rtol=1e-4)

    # --- f32 path: exact vs. the PyTorch module semantics. ------------------
    params_f32 = generator_init(w, b, w_dtype=jnp.float32)
    out_f32 = jax.block_until_ready(generator_forward(x, params_f32))
    ref_f32 = x[:, 0, :] @ w + b
    assert jnp.allclose(out_f32, ref_f32, atol=1e-5, rtol=1e-5)

    # --- Tiled-K fallback path (tiny tile budget forces n_k > 1, n_v > 1). --
    D2, V2 = 512, 384
    kx2, kw2, kb2 = jax.random.split(jax.random.PRNGKey(1), 3)
    x2 = jax.random.normal(kx2, (B, S, D2), dtype=jnp.float32)
    w2 = jax.random.uniform(kw2, (D2, V2), minval=-0.1, maxval=0.1,
                            dtype=jnp.float32)
    b2 = jax.random.uniform(kb2, (V2,), minval=-0.1, maxval=0.1,
                            dtype=jnp.float32)
    params2 = generator_init(w2, b2, w_dtype=jnp.float32,
                             max_w_tile_bytes=128 * 128 * 4)  # force 128x128 tiles
    out2 = jax.block_until_ready(generator_forward(x2, params2))
    ref2 = x2[:, 0, :] @ w2 + b2
    assert out2.shape == (B, V2)
    assert jnp.allclose(out2, ref2, atol=1e-3, rtol=1e-3)

    print("KERNEL_OK")
</pallas_src>

<mosaic_0001>
module attributes {stable_mosaic.version = 11 : i64} {
  func.func @_generator_kernel_fused_k(%arg0: i32, %arg1: memref<16x128xbf16, #tpu.memory_space<vmem>>, %arg2: memref<128x128xbf16, #tpu.memory_space<vmem>>, %arg3: memref<1x128xf32, #tpu.memory_space<vmem>>, %arg4: memref<16x128xf32, #tpu.memory_space<vmem>>) attributes {dimension_semantics = [#tpu.dimension_semantics<parallel>], iteration_bounds = array<i64: 1>, scalar_prefetch = 0 : i64, scratch_operands = 0 : i64, tpu.core_type = #tpu.core_type<tc>, window_params = [{pipeline_mode = #tpu.pipeline_mode<synchronous>, transform_indices = @transform_0, window_bounds = array<i64: 16, 128>}, {transform_indices = @transform_1, window_bounds = array<i64: 128, 128>}, {transform_indices = @transform_2, window_bounds = array<i64: 1, 128>}, {transform_indices = @transform_3, window_bounds = array<i64: 16, 128>}]} {
    %c0 = arith.constant 0 : index
    %c0_0 = arith.constant 0 : index
    %0 = vector.load %arg1[%c0, %c0_0] : memref<16x128xbf16, #tpu.memory_space<vmem>>, vector<16x128xbf16>
    %c0_1 = arith.constant 0 : index
    %c0_2 = arith.constant 0 : index
    %1 = vector.load %arg2[%c0_1, %c0_2] : memref<128x128xbf16, #tpu.memory_space<vmem>>, vector<128x128xbf16>
    %cst = arith.constant dense<0.000000e+00> : vector<16x128xf32>
    %2 = tpu.matmul %0, %1, %cst {dimension_numbers = #tpu.dot_dimension_numbers<[1], [0], [0], [1], [0, 0, 1, 1], [], []>} : vector<16x128xbf16>, vector<128x128xbf16>, vector<16x128xf32> -> vector<16x128xf32>
    %c0_3 = arith.constant 0 : index
    %c0_4 = arith.constant 0 : index
    %3 = vector.load %arg3[%c0_3, %c0_4] : memref<1x128xf32, #tpu.memory_space<vmem>>, vector<1x128xf32>
    %4 = vector.broadcast %3 : vector<1x128xf32> to vector<16x128xf32>
    %5 = arith.addf %2, %4 : vector<16x128xf32>
    %c0_5 = arith.constant 0 : index
    %c0_6 = arith.constant 0 : index
    %6 = vector.load %arg4[%c0_5, %c0_6] : memref<16x128xf32, #tpu.memory_space<vmem>>, vector<16x128xf32>
    tpu.vector_store %arg4[%c0_5, %c0_6], %5 {strides = array<i32>} : memref<16x128xf32, #tpu.memory_space<vmem>>, vector<16x128xf32>,
    return
  }
  func.func @transform_0(%arg0: i32) -> (i32, i32) {
    %c0_i32 = arith.constant 0 : i32
    %c0_i32_0 = arith.constant 0 : i32
    %c0_i32_1 = arith.constant 0 : i32
    return %c0_i32, %c0_i32_0 : i32, i32
  }
  func.func @transform_1(%arg0: i32) -> (i32, i32) {
    %c0_i32 = arith.constant 0 : i32
    %c0_i32_0 = arith.constant 0 : i32
    return %c0_i32, %arg0 : i32, i32
  }
  func.func @transform_2(%arg0: i32) -> (i32, i32) {
    %c0_i32 = arith.constant 0 : i32
    %c0_i32_0 = arith.constant 0 : i32
    return %c0_i32, %arg0 : i32, i32
  }
  func.func @transform_3(%arg0: i32) -> (i32, i32) {
    %c0_i32 = arith.constant 0 : i32
    %c0_i32_0 = arith.constant 0 : i32
    return %c0_i32, %arg0 : i32, i32
  }
}

</mosaic_0001>

<bundles_post_ra>
// kernel: tpu_custom_call.1
= control target key start
LH: loop header
LB: loop body
LE: loop exit
PB: predicated region body
PF: predicated region fallthrough
CT: control target
= control target key end

     0   :  { %8 = vsyncpa [#allocation3], 0  ;;  %s329_s0 = inlined_call_operand.hbm [shape: bf16[16,128], index: 0, kind: input, shape index: {}]   ;;  %s330_s1 = inlined_call_operand.hbm [shape: bf16[128,128], index: 1, kind: input, shape index: {}]   ;;  %s331_s2 = inlined_call_operand.vmem [shape: f32[1,128], index: 2, kind: input, shape index: {}]   ;;  %s332_s3 = inlined_call_operand.hbm [shape: f32[16,128], index: 3, kind: output, shape index: {}]  }
   0x1   :  { %9 = vsyncpa [#allocation6], 0 }
   0x2   :  { %10 = vsyncpa [#allocation4], 0  ;;  %s15_s14 = sshll.u32 %s329_s0, 4  ;;  %s290_s15 = smov [#allocation2]   ;;  %s16_s14 = int_to_ptr.hbm [resolvable:$true] %s15_s14 }
   0x3   :  { %s17_s16 = sshll.u32 %s290_s15, 4  ;;  %s28_s19 = sshll.u32 %s330_s1, 4  ;;  %s18_s16 = int_to_ptr.vmem [resolvable:$true] %s17_s16  ;;  %s29_s19 = int_to_ptr.hbm [resolvable:$true] %s28_s19 }
   0x4   :  { %s291_s20 = smov 64   ;;  %s292_s21 = smov 4  }
   0x5   :  { %23 = dma.hbm_to_vmem [thread:$0]  %s16_s14, 128, %s18_s16, [#allocation3], %s291_s20, %s291_s20, %s292_s21  }
   0x6   :  { %s293_s22 = smov [#allocation5]  }
   0x7   :  { %s30_s23 = sshll.u32 %s293_s22, 4  ;;  %s31_s23 = int_to_ptr.vmem [resolvable:$true] %s30_s23 }
   0x8   :  { %36 = dma.hbm_to_vmem [thread:$0]  %s29_s19, 1024, %s31_s23, [#allocation6], %s291_s20, %s291_s20, %s292_s21  }
   0x9   :  { %284 = dma.done.wait [#allocation3], 128  }
   0xa   :  { %285 = vsyncadd [#allocation3], 4294967168 }
   0xb   :  { %286 = dma.done.wait [#allocation6], 1024  }
   0xc   :  { %287 = vsyncadd [#allocation6], 4294966272  ;;  %v203_v0 = vld [vmem:[#allocation5 + $0x38] sm:$0xff]  ;;  %v202_v1 = vld [vmem:[#allocation5 + $0x30] sm:$0xff]  ;;  %s294_s24 = smov [#allocation7]   ;;  %s145_s28 = sshll.u32 %s332_s3, 4  ;;  %s146_s28 = int_to_ptr.hbm [resolvable:$true] %s145_s28 }
   0xd   :  { %123 = vmatpush.bf16.msra.mxu0 %v203_v0  ;;  %v201_v2 = vld [vmem:[#allocation5 + $0x28] sm:$0xff]  ;;  %v200_v3 = vld [vmem:[#allocation5 + $0x20] sm:$0xff]  ;;  %v199_v4 = vld [vmem:[#allocation5 + $0x18] sm:$0xff]  ;;  %s143_s25 = sshll.u32 %s294_s24, 4  ;;  %s295_s29 = smov 128   ;;  %s144_s25 = int_to_ptr.vmem [resolvable:$true] %s143_s25 }
   0xe   :  { %v198_v5 = vld [vmem:[#allocation5 + $0x10] sm:$0xff]  ;;  %v197_v6 = vld [vmem:[#allocation5 + $0x8] sm:$0xff]  ;;  %v196_v7 = vld [vmem:[#allocation5] sm:$0xff]  ;;  %s296_s30 = smov 8  }
   0xf   :  { %v195_v8 = vld [vmem:[#allocation2] sm:$0xff] }
  0x10   :  { %v211_v9 = vld [vmem:[%s331_s2] ss:$0 sm:$0xff] }
  0x11   :  { %124 = vmatpush.bf16.msra.mxu0 %v202_v1 }
  0x15   :  { %125 = vmatpush.bf16.msra.mxu0 %v201_v2 }
  0x19   :  { %126 = vmatpush.bf16.msra.mxu0 %v200_v3 }
  0x1d   :  { %127 = vmatpush.bf16.msra.mxu0 %v199_v4 }
  0x21   :  { %128 = vmatpush.bf16.msra.mxu0 %v198_v5 }
  0x25   :  { %129 = vmatpush.bf16.msra.mxu0 %v197_v6 }
  0x29   :  { %130 = vmatpush.bf16.msra.mxu0 %v196_v7 }
  0x2c   :  { %131 = vmatmul.bf16.vlgmr.msra.gmra.mxu0 %v195_v8 }
  0xa9   :  { %v132_v10 = vpop.f32.mrf.mxu0 }
  0xaa   :  { %v133_v11 = vadd.f32 %v211_v9, %v132_v10 }
  0xac   :  { %137 = vst [vmem:[#allocation7] sm:$0xff] %v133_v11 }
  0xb1   :  { %v134_v12 = vpop.f32.mrf.mxu0 }
  0xb2   :  { %v135_v13 = vadd.f32 %v211_v9, %v134_v12 }
  0xb4   :  { %138 = vst [vmem:[#allocation7 + $0x8] sm:$0xff] %v135_v13 }
  0xb5   :  { %151 = dma.vmem_to_hbm [thread:$0]  %s144_s25, 256, %s146_s28, [#allocation4], %s295_s29, %s295_s29, %s296_s30  }
  0xb6   :  { %288 = dma.done.wait [#allocation4], 256  }
  0xb7   :  { %289 = vsyncadd [#allocation4], 4294967040 }
  0xb8   :  { %156 = vsyncpa [#allocation3], 1 }
  0xb9   :  { %157 = vsyncpa [#allocation6], 1 }
  0xba   :  { %158 = vsyncpa [#allocation4], 1 }

</bundles_post_ra>
